<compile_context>
chip_gen: v7x
topology: tpu7x:2x2x1
jax: 0.10.0
libtpu: 0.0.40
codegen_flags: <defaults>
</compile_context>

<pallas_src>
import functools

import jax
import jax.numpy as jnp
from jax import lax
from jax.experimental import pallas as pl
from jax.experimental.pallas import tpu as pltpu


def _vmem_capacity_bytes():
    """Physical VMEM per TensorCore; conservative fallback if query fails."""
    try:
        return int(pltpu.get_tpu_info().vmem_capacity_bytes)
    except Exception:
        return 64 * 1024 * 1024  # v7x per-TC VMEM (smallest of the three gens)


# --------------------------------------------------------------------------
# Kernel A: q-tiled, K/V fully VMEM-resident, writes attention + context.
# --------------------------------------------------------------------------
def _attn_kernel(q_ref, k_ref, v_ref, ctx_ref, attn_ref, *,
                 scale, qk_bf16, pv_bf16, approx_reciprocal):
    # Blocks: q [BB, TQ, D], k [BB, Lk, D], v [BB, Lk, Dv]
    q = q_ref[...]
    k = k_ref[...]
    v = v_ref[...]

    # Fold the scale into q: TQ*D multiplies instead of TQ*Lk on the scores.
    if scale:  # mirror torch's `if scale:` truthiness
        q = q * jnp.asarray(scale, dtype=q.dtype)

    # scores = q @ k^T, contracting D against D directly on the MXU
    # (k stays in [Lk, D] layout; no XLU transpose). bf16 operands with f32
    # accumulation is the fast native MXU mode on v5e/v6e/v7x.
    qk_dtype = jnp.bfloat16 if (qk_bf16 and q.dtype == jnp.float32) else q.dtype
    s = lax.dot_general(
        q.astype(qk_dtype), k.astype(qk_dtype),
        dimension_numbers=(((2,), (2,)), ((0,), (0,))),
        preferred_element_type=jnp.float32)            # [BB, TQ, Lk]

    # TODO(synk): attn_mask (masked_fill with -inf) not wired up — the torch
    # forward only applies it when a mask is passed, and none is passed here.

    # softmax over the Lk axis (dim=2 in the torch module), numerically stable.
    m = jnp.max(s, axis=-1, keepdims=True)
    e = jnp.exp(s - m)
    denom = jnp.sum(e, axis=-1, keepdims=True)
    p = e * pl.reciprocal(denom, approx=approx_reciprocal)

    # Cast the probabilities once and reuse for both the attention store and
    # the P@V operand when the dtypes agree (saves a full-tile VALU pass).
    pv_dtype = jnp.bfloat16 if pv_bf16 else v.dtype
    p_attn = p.astype(attn_ref.dtype)
    attn_ref[...] = p_attn
    p_mm = p_attn if attn_ref.dtype == pv_dtype else p.astype(pv_dtype)

    # TODO(synk): the V (and K) dtype cast could be hoisted into a VMEM scratch
    # under pl.when(program_id(1) == 0) when Lq/block_q is large; it is a no-op
    # when inputs are already bf16.
    ctx = lax.dot_general(
        p_mm, v.astype(pv_dtype),
        dimension_numbers=(((2,), (1,)), ((0,), (0,))),
        preferred_element_type=jnp.float32)            # [BB, TQ, Dv]
    ctx_ref[...] = ctx.astype(ctx_ref.dtype)

    # dropout(p=0.0) is the identity at inference; nothing to do.


# --------------------------------------------------------------------------
# Kernel B: flash-style (online softmax), Lk tiled as a grid axis, context only.
# Removes the attention HBM writeback and bounds VMEM for long contexts.
# --------------------------------------------------------------------------
def _flash_kernel(q_ref, k_ref, v_ref, ctx_ref, m_sc, l_sc, acc_sc, *,
                  scale, qk_bf16, pv_bf16, approx_reciprocal, lk_total, block_k):
    kv = pl.program_id(2)

    @pl.when(kv == 0)
    def _():
        m_sc[...] = jnp.full_like(m_sc, -jnp.inf)
        l_sc[...] = jnp.zeros_like(l_sc)
        acc_sc[...] = jnp.zeros_like(acc_sc)

    q = q_ref[...]
    k = k_ref[...]
    if scale:
        q = q * jnp.asarray(scale, dtype=q.dtype)

    qk_dtype = jnp.bfloat16 if (qk_bf16 and q.dtype == jnp.float32) else q.dtype
    s = lax.dot_general(
        q.astype(qk_dtype), k.astype(qk_dtype),
        dimension_numbers=(((2,), (2,)), ((0,), (0,))),
        preferred_element_type=jnp.float32)            # [BB, TQ, TK]

    # Mask out padded keys on the last (partial) Lk tile.
    if lk_total % block_k != 0:
        k_idx = kv * block_k + lax.broadcasted_iota(jnp.int32, s.shape, 2)
        s = jnp.where(k_idx < lk_total, s, jnp.float32(-1e30))

    m_prev = m_sc[...]
    m_new = jnp.maximum(m_prev, jnp.max(s, axis=-1, keepdims=True))
    alpha = jnp.exp(m_prev - m_new)
    p = jnp.exp(s - m_new)
    l_sc[...] = alpha * l_sc[...] + jnp.sum(p, axis=-1, keepdims=True)

    pv_dtype = jnp.bfloat16 if pv_bf16 else v_ref.dtype
    acc_sc[...] = alpha * acc_sc[...] + lax.dot_general(
        p.astype(pv_dtype), v_ref[...].astype(pv_dtype),
        dimension_numbers=(((2,), (1,)), ((0,), (0,))),
        preferred_element_type=jnp.float32)
    m_sc[...] = m_new

    @pl.when(kv == pl.num_programs(2) - 1)
    def _():
        ctx_ref[...] = (acc_sc[...] *
                        pl.reciprocal(l_sc[...], approx=approx_reciprocal)
                        ).astype(ctx_ref.dtype)


# --------------------------------------------------------------------------
# Wrapper
# --------------------------------------------------------------------------
def dot_attention(q, k, v, scale=None, attn_mask=None, *,
                  return_attention=True,
                  qk_bf16=True, pv_bf16=True, approx_reciprocal=True,
                  block_q=None, block_k=None, block_b=None,
                  vmem_limit_bytes=None):
    """Pallas scaled dot-product attention.

    q: [B, Lq, D], k: [B, Lk, D], v: [B, Lk, Dv]
    Returns (context, attention) when return_attention=True (module semantics),
    otherwise just context (flash path, no attention HBM writeback).
    NOTE: approx_reciprocal=True means attention rows sum to 1 only to ~1e-3.
    """
    if attn_mask is not None:
        # TODO(synk): boolean attn_mask (masked_fill -inf) not implemented.
        raise NotImplementedError("attn_mask is not supported in the Pallas kernel")

    B, Lq, D = q.shape
    Bk, Lk, Dk = k.shape
    Bv, Lkv, Dv = v.shape
    assert Bk == B and Bv == B and Dk == D and Lkv == Lk

    itemsize = jnp.dtype(q.dtype).itemsize
    cap = _vmem_capacity_bytes()
    # Generation-aware tiling budget: ~48 MiB on v7x (64 MiB VMEM),
    # ~96 MiB on v5e/v6e (128 MiB VMEM).
    budget = max(32 * 1024 * 1024, int(0.75 * cap))

    # ---- tile selection --------------------------------------------------
    # Prefer a large, MXU-height q tile first; only pack several batch elements
    # per step when Lq itself is tiny (amortizes the ~0.35us/step grid overhead).
    if block_q is None:
        block_q = Lq if Lq <= 512 else 512
    block_q = max(1, min(block_q, Lq))
    if block_q < Lq:
        block_q = max(8, (block_q // 8) * 8)      # keep (8,128)-legal tiles

    if block_b is None:
        block_b = min(B, max(1, 256 // max(block_q, 1)))
    block_b = max(1, min(block_b, B))

    mib = 1024 * 1024

    if return_attention:
        # ---- Kernel A: attention + context, K/V fully resident ------------
        # TODO(synk): Lk is not tiled on this path (attention output needs the
        # full row); for very long contexts use return_attention=False.
        def est(bb, tq):
            blocks = bb * (tq * D + Lk * D + Lk * Dv + tq * Dv + tq * Lk) * itemsize
            interm = bb * tq * Lk * 4 * 3   # s, exp, prob f32 temporaries
            return 2 * blocks + interm

        while est(block_b, block_q) > budget and block_b > 1:
            block_b = max(1, block_b // 2)
        while est(block_b, block_q) > budget and block_q > 8:
            block_q = max(8, ((block_q // 2) // 8) * 8)

        if vmem_limit_bytes is None:
            vmem_limit_bytes = int(min(max(2 * est(block_b, block_q), 32 * mib),
                                       int(0.9 * cap)))

        grid = (pl.cdiv(B, block_b), pl.cdiv(Lq, block_q))

        kernel = functools.partial(
            _attn_kernel, scale=scale, qk_bf16=qk_bf16, pv_bf16=pv_bf16,
            approx_reciprocal=approx_reciprocal)

        out_shapes = (
            jax.ShapeDtypeStruct((B, Lq, Dv), q.dtype),   # context
            jax.ShapeDtypeStruct((B, Lq, Lk), q.dtype),   # attention
        )

        grid_spec = pltpu.PrefetchScalarGridSpec(
            num_scalar_prefetch=0,
            grid=grid,
            in_specs=[
                pl.BlockSpec((block_b, block_q, D), lambda b, i: (b, i, 0)),
                pl.BlockSpec((block_b, Lk, D), lambda b, i: (b, 0, 0)),
                pl.BlockSpec((block_b, Lk, Dv), lambda b, i: (b, 0, 0)),
            ],
            out_specs=[
                pl.BlockSpec((block_b, block_q, Dv), lambda b, i: (b, i, 0)),
                pl.BlockSpec((block_b, block_q, Lk), lambda b, i: (b, i, 0)),
            ],
        )

        flops = 2 * B * Lq * Lk * (D + Dv)
        bytes_accessed = itemsize * (B * Lq * D + B * Lk * D + B * Lk * Dv
                                     + B * Lq * Dv + B * Lq * Lk)
        cost = pl.CostEstimate(flops=flops, transcendentals=B * Lq * Lk,
                               bytes_accessed=bytes_accessed)

        return pl.pallas_call(
            kernel,
            out_shape=out_shapes,
            grid_spec=grid_spec,
            cost_estimate=cost,
            compiler_params=pltpu.CompilerParams(
                # q-tile axis "arbitrary": megacore shards batch only, so both
                # cores do not fetch identical K/V blocks.
                dimension_semantics=("parallel", "arbitrary"),
                vmem_limit_bytes=vmem_limit_bytes),
        )(q, k, v)

    # ---- Kernel B: flash path, Lk tiled, context only ----------------------
    if block_k is None:
        block_k = Lk if Lk <= 1024 else 512
    block_k = max(1, min(block_k, Lk))
    if block_k < Lk:
        block_k = max(128, (block_k // 128) * 128)

    def est(bb, tq, tk):
        blocks = bb * (tq * D + tk * D + tk * Dv + tq * Dv) * itemsize
        scratch = bb * tq * (Dv + 2) * 4
        interm = bb * tq * tk * 4 * 3
        return 2 * blocks + scratch + interm

    while est(block_b, block_q, block_k) > budget and block_b > 1:
        block_b = max(1, block_b // 2)
    while est(block_b, block_q, block_k) > budget and block_k > 128:
        block_k = max(128, ((block_k // 2) // 128) * 128)
    while est(block_b, block_q, block_k) > budget and block_q > 8:
        block_q = max(8, ((block_q // 2) // 8) * 8)

    if vmem_limit_bytes is None:
        vmem_limit_bytes = int(min(max(2 * est(block_b, block_q, block_k), 32 * mib),
                                   int(0.9 * cap)))

    grid = (pl.cdiv(B, block_b), pl.cdiv(Lq, block_q), pl.cdiv(Lk, block_k))

    kernel = functools.partial(
        _flash_kernel, scale=scale, qk_bf16=qk_bf16, pv_bf16=pv_bf16,
        approx_reciprocal=approx_reciprocal, lk_total=Lk, block_k=block_k)

    grid_spec = pltpu.PrefetchScalarGridSpec(
        num_scalar_prefetch=0,
        grid=grid,
        in_specs=[
            pl.BlockSpec((block_b, block_q, D), lambda b, i, kv: (b, i, 0)),
            pl.BlockSpec((block_b, block_k, D), lambda b, i, kv: (b, kv, 0)),
            pl.BlockSpec((block_b, block_k, Dv), lambda b, i, kv: (b, kv, 0)),
        ],
        out_specs=pl.BlockSpec((block_b, block_q, Dv), lambda b, i, kv: (b, i, 0)),
        scratch_shapes=[
            pltpu.VMEM((block_b, block_q, 1), jnp.float32),    # running max
            pltpu.VMEM((block_b, block_q, 1), jnp.float32),    # running denom
            pltpu.VMEM((block_b, block_q, Dv), jnp.float32),   # accumulator
        ],
    )

    flops = 2 * B * Lq * Lk * (D + Dv)
    bytes_accessed = itemsize * (B * Lq * D + B * Lk * D + B * Lk * Dv + B * Lq * Dv)
    cost = pl.CostEstimate(flops=flops, transcendentals=B * Lq * Lk,
                           bytes_accessed=bytes_accessed)

    return pl.pallas_call(
        kernel,
        out_shape=jax.ShapeDtypeStruct((B, Lq, Dv), q.dtype),
        grid_spec=grid_spec,
        cost_estimate=cost,
        compiler_params=pltpu.CompilerParams(
            dimension_semantics=("parallel", "parallel", "arbitrary"),
            vmem_limit_bytes=vmem_limit_bytes),
    )(q, k, v)


# --------------------------------------------------------------------------
# Reference + demo
# --------------------------------------------------------------------------
def _reference(q, k, v, scale=None):
    s = jnp.einsum("bqd,bkd->bqk", q, k).astype(jnp.float32)
    if scale:
        s = s * scale
    p = jax.nn.softmax(s, axis=2)
    ctx = jnp.einsum("bqk,bkd->bqd", p, v.astype(jnp.float32))
    return ctx.astype(q.dtype), p


if __name__ == "__main__":
    # Small, deterministic inputs consistent with the module's forward:
    # batch=2, seq=8, hidden=32.
    B, Lq, Lk, D, Dv = 2, 8, 8, 32, 32
    key = jax.random.PRNGKey(0)
    kq, kk, kv = jax.random.split(key, 3)
    q = jax.random.normal(kq, (B, Lq, D), dtype=jnp.float32)
    k = jax.random.normal(kk, (B, Lk, D), dtype=jnp.float32)
    v = jax.random.normal(kv, (B, Lk, Dv), dtype=jnp.float32)
    scale = 1.0 / (D ** 0.5)

    ctx_ref, attn_ref = _reference(q, k, v, scale=scale)

    # 1) Precise path (f32 matmuls, exact reciprocal): tight tolerance.
    ctx_p, attn_p = dot_attention(q, k, v, scale=scale,
                                  qk_bf16=False, pv_bf16=False,
                                  approx_reciprocal=False)
    jax.block_until_ready((ctx_p, attn_p))
    assert jnp.allclose(ctx_p, ctx_ref, atol=1e-5, rtol=1e-5), "context mismatch (precise)"
    assert jnp.allclose(attn_p, attn_ref, atol=1e-5, rtol=1e-5), "attention mismatch (precise)"

    # 2) Fast default path (bf16 QK^T and P@V on the MXU, EUP approx reciprocal).
    ctx_f, attn_f = dot_attention(q, k, v, scale=scale)
    jax.block_until_ready((ctx_f, attn_f))
    assert jnp.allclose(attn_f, attn_ref, atol=3e-2, rtol=3e-2), "attention mismatch (fast)"
    assert jnp.allclose(ctx_f, ctx_ref, atol=1e-1, rtol=1e-1), "context mismatch (fast)"

    # 3) Context-only flash path (no attention writeback, Lk-tiled), precise.
    ctx_fl = dot_attention(q, k, v, scale=scale, return_attention=False,
                           qk_bf16=False, pv_bf16=False, approx_reciprocal=False)
    jax.block_until_ready(ctx_fl)
    assert jnp.allclose(ctx_fl, ctx_ref, atol=1e-5, rtol=1e-5), "context mismatch (flash precise)"

    # 4) Context-only flash path, fast defaults.
    ctx_flf = dot_attention(q, k, v, scale=scale, return_attention=False)
    jax.block_until_ready(ctx_flf)
    assert jnp.allclose(ctx_flf, ctx_ref, atol=1e-1, rtol=1e-1), "context mismatch (flash fast)"

    print("KERNEL_OK")
</pallas_src>

<mosaic_0001>
module attributes {stable_mosaic.version = 11 : i64} {
  func.func @_attn_kernel(%arg0: i32, %arg1: i32, %arg2: memref<2x8x32xf32, #tpu.memory_space<vmem>>, %arg3: memref<2x8x32xf32, #tpu.memory_space<vmem>>, %arg4: memref<2x8x32xf32, #tpu.memory_space<vmem>>, %arg5: memref<2x8x32xf32, #tpu.memory_space<vmem>>, %arg6: memref<2x8x8xf32, #tpu.memory_space<vmem>>) attributes {dimension_semantics = [#tpu.dimension_semantics<parallel>, #tpu.dimension_semantics<arbitrary>], iteration_bounds = array<i64: 1, 1>, scalar_prefetch = 0 : i64, scratch_operands = 0 : i64, tpu.core_type = #tpu.core_type<tc>, window_params = [{transform_indices = @transform_0, window_bounds = array<i64: 2, 8, 32>}, {transform_indices = @transform_1, window_bounds = array<i64: 2, 8, 32>}, {transform_indices = @transform_2, window_bounds = array<i64: 2, 8, 32>}, {transform_indices = @transform_3, window_bounds = array<i64: 2, 8, 32>}, {transform_indices = @transform_4, window_bounds = array<i64: 2, 8, 8>}]} {
    %c0 = arith.constant 0 : index
    %c0_0 = arith.constant 0 : index
    %c0_1 = arith.constant 0 : index
    %0 = vector.load %arg2[%c0, %c0_0, %c0_1] : memref<2x8x32xf32, #tpu.memory_space<vmem>>, vector<2x8x32xf32>
    %c0_2 = arith.constant 0 : index
    %c0_3 = arith.constant 0 : index
    %c0_4 = arith.constant 0 : index
    %1 = vector.load %arg3[%c0_2, %c0_3, %c0_4] : memref<2x8x32xf32, #tpu.memory_space<vmem>>, vector<2x8x32xf32>
    %c0_5 = arith.constant 0 : index
    %c0_6 = arith.constant 0 : index
    %c0_7 = arith.constant 0 : index
    %2 = vector.load %arg4[%c0_5, %c0_6, %c0_7] : memref<2x8x32xf32, #tpu.memory_space<vmem>>, vector<2x8x32xf32>
    %cst = arith.constant 0.176776692 : f32
    %3 = vector.broadcast %cst : f32 to vector<2x8x32xf32>
    %4 = arith.mulf %0, %3 : vector<2x8x32xf32>
    %cst_8 = arith.constant dense<0.000000e+00> : vector<2x8x8xf32>
    %5 = tpu.matmul %4, %1, %cst_8 {dimension_numbers = #tpu.dot_dimension_numbers<[2], [2], [1], [1], [0, 0, 0, 1, 1, 1], [0], [0]>} : vector<2x8x32xf32>, vector<2x8x32xf32>, vector<2x8x8xf32> -> vector<2x8x8xf32>
    %cst_9 = arith.constant dense<0xFF800000> : vector<2x8xf32>
    %6 = vector.multi_reduction <maximumf>, %5, %cst_9 [2] : vector<2x8x8xf32> to vector<2x8xf32>
    %7 = vector.shape_cast %6 : vector<2x8xf32> to vector<2x8x1xf32>
    %8 = vector.broadcast %7 : vector<2x8x1xf32> to vector<2x8x8xf32>
    %9 = arith.subf %5, %8 : vector<2x8x8xf32>
    %10 = math.exp %9 : vector<2x8x8xf32>
    %cst_10 = arith.constant dense<0.000000e+00> : vector<2x8xf32>
    %11 = vector.multi_reduction <add>, %10, %cst_10 [2] : vector<2x8x8xf32> to vector<2x8xf32>
    %12 = vector.shape_cast %11 : vector<2x8xf32> to vector<2x8x1xf32>
    %13 = tpu.reciprocal %12 : vector<2x8x1xf32> -> vector<2x8x1xf32>
    %14 = vector.broadcast %13 : vector<2x8x1xf32> to vector<2x8x8xf32>
    %15 = arith.mulf %10, %14 : vector<2x8x8xf32>
    %c0_11 = arith.constant 0 : index
    %c0_12 = arith.constant 0 : index
    %c0_13 = arith.constant 0 : index
    %16 = vector.load %arg6[%c0_11, %c0_12, %c0_13] : memref<2x8x8xf32, #tpu.memory_space<vmem>>, vector<2x8x8xf32>
    tpu.vector_store %arg6[%c0_11, %c0_12, %c0_13], %15 {strides = array<i32>} : memref<2x8x8xf32, #tpu.memory_space<vmem>>, vector<2x8x8xf32>,
    %cst_14 = arith.constant dense<0.000000e+00> : vector<2x8x32xf32>
    %17 = tpu.matmul %15, %2, %cst_14 {dimension_numbers = #tpu.dot_dimension_numbers<[2], [1], [1], [2], [0, 0, 0, 1, 1, 2], [0], [0]>} : vector<2x8x8xf32>, vector<2x8x32xf32>, vector<2x8x32xf32> -> vector<2x8x32xf32>
    %c0_15 = arith.constant 0 : index
    %c0_16 = arith.constant 0 : index
    %c0_17 = arith.constant 0 : index
    %18 = vector.load %arg5[%c0_15, %c0_16, %c0_17] : memref<2x8x32xf32, #tpu.memory_space<vmem>>, vector<2x8x32xf32>
    tpu.vector_store %arg5[%c0_15, %c0_16, %c0_17], %17 {strides = array<i32>} : memref<2x8x32xf32, #tpu.memory_space<vmem>>, vector<2x8x32xf32>,
    return
  }
  func.func @transform_0(%arg0: i32, %arg1: i32) -> (i32, i32, i32) {
    %c0_i32 = arith.constant 0 : i32
    %c0_i32_0 = arith.constant 0 : i32
    return %arg0, %arg1, %c0_i32 : i32, i32, i32
  }
  func.func @transform_1(%arg0: i32, %arg1: i32) -> (i32, i32, i32) {
    %c0_i32 = arith.constant 0 : i32
    %c0_i32_0 = arith.constant 0 : i32
    %c0_i32_1 = arith.constant 0 : i32
    return %arg0, %c0_i32, %c0_i32_0 : i32, i32, i32
  }
  func.func @transform_2(%arg0: i32, %arg1: i32) -> (i32, i32, i32) {
    %c0_i32 = arith.constant 0 : i32
    %c0_i32_0 = arith.constant 0 : i32
    %c0_i32_1 = arith.constant 0 : i32
    return %arg0, %c0_i32, %c0_i32_0 : i32, i32, i32
  }
  func.func @transform_3(%arg0: i32, %arg1: i32) -> (i32, i32, i32) {
    %c0_i32 = arith.constant 0 : i32
    %c0_i32_0 = arith.constant 0 : i32
    return %arg0, %arg1, %c0_i32 : i32, i32, i32
  }
  func.func @transform_4(%arg0: i32, %arg1: i32) -> (i32, i32, i32) {
    %c0_i32 = arith.constant 0 : i32
    %c0_i32_0 = arith.constant 0 : i32
    return %arg0, %arg1, %c0_i32 : i32, i32, i32
  }
}

</mosaic_0001>

<bundles_post_ra>
// kernel: tpu_custom_call.1
= control target key start
LH: loop header
LB: loop body
LE: loop exit
PB: predicated region body
PF: predicated region fallthrough
CT: control target
= control target key end

     0   :  { %10 = vsyncpa [#allocation3], 0  ;;  %s730_s0 = inlined_call_operand.hbm [shape: f32[2,8,32], index: 0, kind: input, shape index: {}]   ;;  %s731_s1 = inlined_call_operand.hbm [shape: f32[2,8,32], index: 1, kind: input, shape index: {}]   ;;  %s732_s2 = inlined_call_operand.hbm [shape: f32[2,8,32], index: 2, kind: input, shape index: {}]   ;;  %s733_s3 = inlined_call_operand.hbm [shape: f32[2,8,32], index: 3, kind: output, shape index: {0}]   ;;  %s734_s4 = inlined_call_operand.hbm [shape: f32[2,8,8], index: 4, kind: output, shape index: {1}]  }
   0x1   :  { %11 = vsyncpa [#allocation6], 0 }
   0x2   :  { %12 = vsyncpa [#allocation4], 0 }
   0x3   :  { %13 = vsyncpa [#allocation10], 0  ;;  %s596_s15 = smov [#allocation5]   ;;  %s597_s17 = smov [#allocation2]  }
   0x4   :  { %s31_s16 = sshll.u32 %s596_s15, 4  ;;  %s19_s18 = sshll.u32 %s597_s17, 4  ;;  %s32_s16 = int_to_ptr.vmem [resolvable:$true] %s31_s16  ;;  %s630_s18 = int_to_ptr.vmem [resolvable:$true] %s19_s18 }
   0x5   :  { %s478_s21 = scalar_lea.hbm %s731_s1, 256 }
   0x6   :  { %p479_p0 = scmp.ne.s32.totalorder %s731_s1, %s478_s21  ;;  %p482_p1 = scmp.lt.u32.totalorder %s478_s21, %s731_s1 }
   0x8   :  { %p484_p2 = pnand %p482_p1, %p479_p0 }
   0xa   :  { %487 = shalt.err (!%p484_p2)
}
   0xb   :  { %s488_s26 = scalar_lea.vmem %s32_s16, 256  ;;  %p493_p4 = scmp.lt.s32.totalorder %s32_s16, %s32_s16 }
   0xc   :  { %p489_p3 = scmp.ne.s32.totalorder %s32_s16, %s488_s26  ;;  %p494_p5 = scmp.lt.s32.totalorder %s488_s26, %s488_s26 }
   0xe   :  { %p495_p6 = por %p494_p5, %p493_p4 }
  0x10   :  { %p496_p7 = pnand %p495_p6, %p489_p3 }
  0x12   :  { %499 = shalt.err (!%p496_p7)
}
  0x13   :  { %s598_s27 = smov 128   ;;  %s599_s28 = smov 8  }
  0x14   :  { %37 = dma.hbm_to_vmem [thread:$0]  %s731_s1, 256, %s32_s16, [#allocation6], %s598_s27, %s598_s27, %s599_s28  }
  0x15   :  { %s500_s7 = scalar_lea.hbm %s730_s0, 256 }
  0x16   :  { %p501_p8 = scmp.ne.s32.totalorder %s730_s0, %s500_s7  ;;  %p504_p9 = scmp.lt.u32.totalorder %s500_s7, %s730_s0 }
  0x18   :  { %p506_p10 = pnand %p504_p9, %p501_p8 }
  0x1a   :  { %509 = shalt.err (!%p506_p10)
}
  0x1b   :  { %s510_s12 = scalar_lea.vmem %s630_s18, 256  ;;  %p515_p12 = scmp.lt.s32.totalorder %s630_s18, %s630_s18 }
  0x1c   :  { %p511_p11 = scmp.ne.s32.totalorder %s630_s18, %s510_s12  ;;  %p516_p13 = scmp.lt.s32.totalorder %s510_s12, %s510_s12 }
  0x1e   :  { %p517_p0 = por %p516_p13, %p515_p12 }
  0x20   :  { %p518_p1 = pnand %p517_p0, %p511_p11 }
  0x22   :  { %521 = shalt.err (!%p518_p1)
}
  0x23   :  { %25 = dma.hbm_to_vmem [thread:$0]  %s730_s0, 256, %s630_s18, [#allocation3], %s598_s27, %s598_s27, %s599_s28  }
  0x24   :  { %s600_s14 = smov [#allocation7]   ;;  %s522_s19 = scalar_lea.hbm %s732_s2, 256 }
  0x25   :  { %s43_s15 = sshll.u32 %s600_s14, 4  ;;  %p523_p2 = scmp.ne.s32.totalorder %s732_s2, %s522_s19  ;;  %s44_s15 = int_to_ptr.vmem [resolvable:$true] %s43_s15 }
  0x26   :  { %p526_p3 = scmp.lt.u32.totalorder %s522_s19, %s732_s2 }
  0x28   :  { %p528_p4 = pnand %p526_p3, %p523_p2 }
  0x2a   :  { %531 = shalt.err (!%p528_p4)
}
  0x2b   :  { %s532_s24 = scalar_lea.vmem %s44_s15, 256  ;;  %p537_p6 = scmp.lt.s32.totalorder %s44_s15, %s44_s15 }
  0x2c   :  { %p533_p5 = scmp.ne.s32.totalorder %s44_s15, %s532_s24  ;;  %p538_p7 = scmp.lt.s32.totalorder %s532_s24, %s532_s24 }
  0x2e   :  { %p539_p8 = por %p538_p7, %p537_p6 }
  0x30   :  { %p540_p9 = pnand %p539_p8, %p533_p5 }
  0x32   :  { %543 = shalt.err (!%p540_p9)
}
  0x33   :  { %49 = dma.hbm_to_vmem [thread:$0]  %s732_s2, 256, %s44_s15, [#allocation6], %s598_s27, %s598_s27, %s599_s28  }
  0x34   :  { %588 = dma.done.wait [#allocation3], 256  }
  0x35   :  { %589 = vsyncadd [#allocation3], 4294967040 }
  0x36   :  { %590 = dma.done.wait [#allocation6], 512  }
  0x37   :  { %591 = vsyncadd [#allocation6], 4294966784  ;;  %v601_v0 = vmov 0.0   ;;  %vm602_vm0 = vmmov 0   ;;  %vm67_vm1 = vcmask 261120   ;;  %v61_v1 = vld [vmem:[#allocation5] sm:$0xff] }
  0x38   :  { %441 = vmatprep.subr.mxu0 %v601_v0  ;;  %443 = vmatprep.mubr.msk.f32.mxu0 %vm602_vm0, %v601_v0  ;;  %v59_v2 = vld [vmem:[#allocation2] sm:$0xff]  ;;  %v62_v3 = vld [vmem:[#allocation5 + $0x8] sm:$0xff]  ;;  %v60_v5 = vld [vmem:[#allocation2 + $0x8] sm:$0xff]  ;;  %vm220_vm2 = vcmask 64512   ;;  %s603_s2 = smov [#allocation9]  }
  0x39   :  { %446 = vmatprep.subr.mxu1 %v601_v0  ;;  %448 = vmatprep.mubr.msk.f32.mxu1 %vm602_vm0, %v601_v0  ;;  %v65_v4 = vmul.f32 0.17677669, %v59_v2  ;;  %v66_v6 = vmul.f32 0.17677669, %v60_v5  ;;  %v63_v23 = vld [vmem:[#allocation7] sm:$0xff]  ;;  %v64_v24 = vld [vmem:[#allocation7 + $0x8] sm:$0xff] }
  0x3a   :  { %442 = vmatpush3.xpose.msk.msra.mxu0 %vm67_vm1, %v61_v1  ;;  %447 = vmatpush3.xpose.msk.msra.mxu1 %vm67_vm1, %v62_v3  ;;  %s410_s25 = sshll.u32 %s603_s2, 4  ;;  %s411_s25 = int_to_ptr.vmem [resolvable:$true] %s410_s25 }
  0x3b   :  { %451 = vmatprep.subr.mxu0 %v601_v0  ;;  %456 = vmatprep.subr.mxu1 %v601_v0  ;;  %s544_s26 = scalar_lea.vmem %s411_s25, 256  ;;  %p549_p11 = scmp.lt.s32.totalorder %s411_s25, %s411_s25 }
  0x3c   :  { %p545_p10 = scmp.ne.s32.totalorder %s411_s25, %s544_s26  ;;  %p550_p12 = scmp.lt.s32.totalorder %s544_s26, %s544_s26 }
  0x3d   :  { %444 = vmatmul.mubr.msk.f32.vlgmr.msra.gmra.mrb[0].mxu0 %vm67_vm1, %v65_v4  ;;  %449 = vmatmul.mubr.msk.f32.vlgmr.msra.gmra.mrb[0].mxu1 %vm67_vm1, %v66_v6 }
  0x3e   :  { %453 = vmatprep.mubr.msk.f32.mxu0 %vm602_vm0, %v601_v0  ;;  %458 = vmatprep.mubr.msk.f32.mxu1 %vm602_vm0, %v601_v0  ;;  %p551_p13 = por %p550_p12, %p549_p11 }
  0x3f   :  { %452 = vmatpush3.msra.mxu0 %v63_v23  ;;  %457 = vmatpush3.msra.mxu1 %v64_v24 }
  0x40   :  { %p552_p0 = pnand %p551_p13, %p545_p10 }
 0x110   :  { %v140_v7 = vpop.f32.mrb[0].mxu0  ;;  %v216_v8 = vpop.f32.mrb[0].mxu1 }
 0x111   :  { %v445_v9 = vpop.f32.mrb[1].mxu0  ;;  %v221_v10 = vsel %vm220_vm2, %v140_v7, -inf  ;;  %v450_v11 = vpop.f32.mrb[1].mxu1  ;;  %v224_v12 = vsel %vm220_vm2, %v216_v8, -inf }
 0x112   :  { %222 = vmax.xlane.f32.xlu0 %v221_v10 }
 0x116   :  { %225 = vmax.xlane.f32.xlu0 %v224_v12 }
 0x19f   :  { %v223_v13 = vpop.xlane.xlu0 %222 }
 0x1a0   :  { %v227_v14 = vsub.f32 %v140_v7, %v223_v13 }
 0x1a2   :  { %v229_v15 = vmul.f32 1.442695, %v227_v14 }
 0x1a3   :  { %v226_v16 = vpop.xlane.xlu0 %225 }
 0x1a4   :  { %470 = vpow2.f32 %v229_v15  ;;  %v228_v17 = vsub.f32 %v216_v8, %v226_v16 }
 0x1a6   :  { %v231_v18 = vmul.f32 1.442695, %v228_v17 }
 0x1a8   :  { %472 = vpow2.f32 %v231_v18 }
 0x1ae   :  { %v471_v19 = vpop.eup %470 }
 0x1af   :  { %v233_v20 = vsel %vm220_vm2, %v471_v19, 0.0 }
 0x1b0   :  { %234 = vadd.xlane.f32.xlu1 %v233_v20 }
 0x1b2   :  { %v473_v21 = vpop.eup %472 }
 0x1b3   :  { %v236_v22 = vsel %vm220_vm2, %v473_v21, 0.0 }
 0x1b4   :  { %237 = vadd.xlane.f32.xlu1 %v236_v22 }
 0x23d   :  { %v235_v25 = vpop.xlane.xlu1 %234 }
 0x23e   :  { %474 = vrcp.f32 %v235_v25 }
 0x241   :  { %v238_v26 = vpop.xlane.xlu1 %237 }
 0x242   :  { %476 = vrcp.f32 %v238_v26 }
 0x248   :  { %v475_v27 = vpop.eup %474 }
 0x249   :  { %v241_v28 = vmul.f32 %v475_v27, %v471_v19 }
 0x24b   :  { %243 = vst.msk [vmem:[#allocation9] sm:$0xff] %vm220_vm2, %v241_v28  ;;  %454 = vmatmul.mubr.msk.f32.vlgmr.msra.gmra.mrb[2].mxu0 %vm220_vm2, %v241_v28 }
 0x24c   :  { %v477_v29 = vpop.eup %476 }
 0x24d   :  { %v242_v30 = vmul.f32 %v477_v29, %v473_v21 }
 0x24f   :  { %244 = vst.msk [vmem:[#allocation9 + $0x8] sm:$0xff] %vm220_vm2, %v242_v30  ;;  %459 = vmatmul.mubr.msk.f32.vlgmr.msra.gmra.mrb[2].mxu1 %vm220_vm2, %v242_v30 }
 0x250   :  { %555 = shalt.err (!%p552_p0)
}
 0x251   :  { %s556_s5 = scalar_lea.hbm %s734_s4, 256 }
 0x252   :  { %p557_p1 = scmp.ne.s32.totalorder %s734_s4, %s556_s5  ;;  %p560_p2 = scmp.lt.u32.totalorder %s556_s5, %s734_s4 }
 0x254   :  { %p562_p3 = pnand %p560_p2, %p557_p1 }
 0x256   :  { %565 = shalt.err (!%p562_p3)
}
 0x257   :  { %416 = dma.vmem_to_hbm [thread:$0]  %s411_s25, 256, %s734_s4, [#allocation10], %s598_s27, %s598_s27, %s599_s28  }
 0x258   :  { %s604_s12 = smov [#allocation8]  }
 0x259   :  { %s398_s1 = sshll.u32 %s604_s12, 4  ;;  %s399_s1 = int_to_ptr.vmem [resolvable:$true] %s398_s1 }
 0x25a   :  { %s566_s13 = scalar_lea.vmem %s399_s1, 256  ;;  %p571_p5 = scmp.lt.s32.totalorder %s399_s1, %s399_s1 }
 0x25b   :  { %p567_p4 = scmp.ne.s32.totalorder %s399_s1, %s566_s13  ;;  %p572_p6 = scmp.lt.s32.totalorder %s566_s13, %s566_s13 }
 0x25d   :  { %p573_p7 = por %p572_p6, %p571_p5 }
 0x25f   :  { %p574_p8 = pnand %p573_p7, %p567_p4 }
 0x31e   :  { %v314_v31 = vpop.f32.mrb[2].mxu0 }
 0x31f   :  { %391 = vst.msk [vmem:[#allocation8] sm:$0xff] %vm67_vm1, %v314_v31  ;;  %v455_v32 = vpop.f32.mrb[3].mxu0 }
 0x322   :  { %v387_v33 = vpop.f32.mrb[2].mxu1 }
 0x323   :  { %392 = vst.msk [vmem:[#allocation8 + $0x8] sm:$0xff] %vm67_vm1, %v387_v33  ;;  %v460_v34 = vpop.f32.mrb[3].mxu1 }
 0x324   :  { %577 = shalt.err (!%p574_p8)
}
 0x325   :  { %s578_s15 = scalar_lea.hbm %s733_s3, 256 }
 0x326   :  { %p579_p9 = scmp.ne.s32.totalorder %s733_s3, %s578_s15  ;;  %p582_p10 = scmp.lt.u32.totalorder %s578_s15, %s733_s3 }
 0x328   :  { %p584_p11 = pnand %p582_p10, %p579_p9 }
 0x32a   :  { %587 = shalt.err (!%p584_p11)
}
 0x32b   :  { %404 = dma.vmem_to_hbm [thread:$0]  %s399_s1, 256, %s733_s3, [#allocation4], %s598_s27, %s598_s27, %s599_s28  }
 0x32c   :  { %592 = dma.done.wait [#allocation4], 256  }
 0x32d   :  { %593 = vsyncadd [#allocation4], 4294967040 }
 0x32e   :  { %594 = dma.done.wait [#allocation10], 256  }
 0x32f   :  { %595 = vsyncadd [#allocation10], 4294967040 }
 0x330   :  { %423 = vsyncpa [#allocation3], 1 }
 0x331   :  { %424 = vsyncpa [#allocation6], 1 }
 0x332   :  { %425 = vsyncpa [#allocation4], 1 }
 0x333   :  { %426 = vsyncpa [#allocation10], 1 }

</bundles_post_ra>
